<compile_context>
chip_gen: v7x
topology: tpu7x:2x2x1
jax: 0.10.0
libtpu: 0.0.40
codegen_flags: <defaults>
</compile_context>

<pallas_src>
import functools

import jax
import jax.numpy as jnp
from jax import lax
from jax.experimental import pallas as pl
from jax.experimental.pallas import tpu as pltpu


# ----------------------------------------------------------------------------
# Generation-aware VMEM sizing
# ----------------------------------------------------------------------------
def _vmem_budgets():
    """(tile-picking budget, vmem_limit_bytes) derived from the actual chip.

    v5e/v6e (128 MiB VMEM) -> ~60 MiB budget, ~102 MiB limit.
    v7x      (64 MiB VMEM) -> ~28 MiB budget, ~51 MiB limit.
    """
    try:
        cap = int(pltpu.get_tpu_info().vmem_capacity_bytes)
    except Exception:  # conservative (v7x-sized) fallback if the query fails
        cap = 64 * 1024 * 1024
    budget = max(16 << 20, int(cap * 0.5) - (4 << 20))
    limit = min(cap - (2 << 20), int(cap * 0.8))
    return budget, limit


def _pick_batch_tile(batch, seq, hidden, out_dim, budget_bytes,
                     target_rows=512):
    """Largest legal batch tile fitting the VMEM budget.

    Legal: divides `batch` and is a multiple of 8 (or equals `batch`) so the
    (tile, D) output block satisfies the (8, 128) layout rule.  Prefers tiles
    that leave >= 2 grid steps (keeps both v7x TensorCores busy).  Fallback is
    the SMALLEST legal tile (never the whole batch) so it cannot blow the
    budget.  Weights are counted single-buffered (they are whole-array
    VMEM-resident, not pipelined).
    """
    per_row = (2 * (seq * hidden * 2)     # bf16 emb tile, double-buffered
               + 2 * (seq * 4)            # f32 mask tile, double-buffered
               + 2 * (out_dim * 4))       # f32 reps out, double-buffered
    fixed = (hidden * out_dim * 2         # bf16 W, single-buffered (resident)
             + out_dim * 4                # f32 bias
             + target_rows * out_dim * 4  # f32 per-chunk activation bound
             + (2 << 20))                 # compiler scratch slack
    limit = max(1, (budget_bytes - fixed) // per_row)
    valid = [t for t in range(1, batch + 1)
             if batch % t == 0 and (t % 8 == 0 or t == batch)]
    fitting = [t for t in valid if t <= limit]
    if not fitting:
        return min(valid)                 # best effort: smallest legal tile
    multi = [t for t in fitting if batch // t >= 2]
    return max(multi) if multi else max(fitting)


def _pick_seq_chunk(seq, batch_tile, target_rows=512):
    """Seq chunk so the flattened (tile*chunk, H) matmul stays ~target_rows
    rows; chunk divides S and is sublane-aligned (multiple of 8, or S)."""
    for c in range(seq, 0, -1):
        if seq % c == 0 and (c % 8 == 0 or c == seq) and batch_tile * c <= target_rows:
            return c
    cands = [c for c in range(1, seq + 1) if seq % c == 0 and (c % 8 == 0 or c == seq)]
    return min(cands)


# ----------------------------------------------------------------------------
# Kernel 1: "encode" — synthetic encoder + masked-mean pooling + L2 normalize
#   * grid tiled over batch ("parallel" -> megacore sharding on multi-TC chips)
#   * dense+tanh+pool chunked over S: matmul-chunk -> +bias -> tanh ->
#     *mask-chunk -> accumulate into a (Bt, D) f32 accumulator (the full
#     (Bt*S, D) f32 activation never exists in VMEM)
#   * pooling is a VPU multiply + sublane (XLU) reduce — no MXU involvement
#   * weights/bias are whole-array VMEM-resident (single-buffered)
# ----------------------------------------------------------------------------
def _encode_kernel(emb_ref, mask_ref, w_ref, b_ref, out_ref, *,
                   normalized, seq_chunk):
    bt, s, h = emb_ref.shape
    d = w_ref.shape[1]

    bias = b_ref[...]                                   # (1, D)  f32
    mask = mask_ref[...]                                # (Bt, S) f32

    ssum = jnp.zeros((bt, d), jnp.float32)
    for c0 in range(0, s, seq_chunk):
        # Stand-in transformer body: dense + tanh.  Flatten the chunk to
        # (Bt*sc, H) so the MXU sees one wide matmul; bf16 operands, f32
        # accumulation; bias/tanh stay f32 (v5e has no bf16 VPU/EUP).
        x = emb_ref[:, c0:c0 + seq_chunk, :].reshape(bt * seq_chunk, h)  # bf16
        hid = jnp.dot(x, w_ref[...], preferred_element_type=jnp.float32)
        hid = jnp.tanh(hid + bias)                      # (Bt*sc, D) f32
        hid = hid.reshape(bt, seq_chunk, d)
        mc = mask[:, c0:c0 + seq_chunk]                 # (Bt, sc)
        # masked pooling: VPU multiply + sublane reduce (XLU); MXU stays free.
        ssum = ssum + jnp.sum(hid * mc[:, :, None], axis=1)

    if normalized:
        # The positive per-row mean denominator cancels under L2 normalization,
        # so skip the divide and normalize ssum directly via rsqrt (EUP path).
        # torch.nn.functional.normalize(p=2, dim=-1, eps=1e-12) equivalent.
        sumsq = jnp.sum(ssum * ssum, axis=-1, keepdims=True)
        out_ref[...] = ssum * lax.rsqrt(jnp.maximum(sumsq, 1e-24))
    else:
        denom = jnp.sum(mask, axis=1, keepdims=True)    # (Bt, 1)
        # Clamp: a fully padded row would otherwise produce NaN (torch would
        # NaN here; this is an intentional, documented divergence).
        out_ref[...] = ssum / jnp.maximum(denom, 1e-9)


def encode(emb, mask, w, b, *, normalized, batch_tile=None):
    B, S, H = emb.shape
    D = w.shape[1]
    budget, vmem_limit = _vmem_budgets()
    if batch_tile is None:
        batch_tile = _pick_batch_tile(B, S, H, D, budget)
    assert B % batch_tile == 0, (B, batch_tile)
    seq_chunk = _pick_seq_chunk(S, batch_tile)
    kernel = functools.partial(_encode_kernel, normalized=normalized,
                               seq_chunk=seq_chunk)
    return pl.pallas_call(
        kernel,
        out_shape=jax.ShapeDtypeStruct((B, D), jnp.float32),
        grid=(B // batch_tile,),
        in_specs=[
            pl.BlockSpec((batch_tile, S, H), lambda i: (i, 0, 0)),
            pl.BlockSpec((batch_tile, S), lambda i: (i, 0)),
            # Whole-array VMEM residents: loaded once, single-buffered.
            pl.BlockSpec(memory_space=pltpu.MemorySpace.VMEM),   # W  (H, D) bf16
            pl.BlockSpec(memory_space=pltpu.MemorySpace.VMEM),   # b  (1, D) f32
        ],
        out_specs=pl.BlockSpec((batch_tile, D), lambda i: (i, 0)),
        compiler_params=pltpu.CompilerParams(
            dimension_semantics=("parallel",),
            vmem_limit_bytes=vmem_limit,
        ),
    )(emb, mask, w, b)


# ----------------------------------------------------------------------------
# Kernel 2: similarity scores + per-row InfoNCE cross-entropy (training path)
#   * grid tiled over Bq ("parallel"); p_reps whole-array VMEM-resident
#   * scores last dim padded to a multiple of 128 -> lane-dense stores
#   * per-row loss output (mean taken in the wrapper) — no (1,1) scalar store
# TODO(synk): once Bp grows (cross-device negatives) tile Bp with an online
# max/logsumexp accumulator instead of keeping p_reps fully resident.
# ----------------------------------------------------------------------------
def _score_loss_kernel(q_ref, p_ref, scores_ref, rloss_ref, *,
                       inv_temperature, num_passages, ratio, q_tile):
    q = q_ref[...]                          # (tq, D)      f32
    p = p_ref[...]                          # (Bp_pad, D)  f32

    # compute_similarity: q @ p.T — contract the feature dim of both operands
    # directly (no explicit transpose/relayout of p), then scale by 1/T.
    s = lax.dot_general(q, p, (((1,), (1,)), ((), ())),
                        preferred_element_type=jnp.float32) * inv_temperature
    scores_ref[...] = s                     # lane-dense (tq, Bp_pad) store

    tq, bp_pad = s.shape
    col = lax.broadcasted_iota(jnp.int32, (tq, bp_pad), 1)
    row = lax.broadcasted_iota(jnp.int32, (tq, bp_pad), 0) + pl.program_id(0) * q_tile
    valid = col < num_passages              # mask out padded passage columns

    # target = arange(Bq) * (Bp // Bq)  (as a one-hot mask; no gather needed)
    tgt_onehot = (col == row * ratio).astype(jnp.float32)
    picked = jnp.sum(s * tgt_onehot, axis=1)            # scores[i, target[i]]

    # CrossEntropyLoss per row = logsumexp(s_i) - s_i[target_i]
    s_m = jnp.where(valid, s, -jnp.inf)
    m = jnp.max(s_m, axis=1, keepdims=True)
    lse = jnp.log(jnp.sum(jnp.exp(s_m - m), axis=1)) + m[:, 0]
    rloss_ref[...] = (lse - picked)[:, None]


def _pick_q_tile(bq, max_tile=128):
    valid = [t for t in range(1, bq + 1) if bq % t == 0 and (t % 8 == 0 or t == bq)]
    small = [t for t in valid if t <= max_tile] or valid
    multi = [t for t in small if bq // t >= 2]
    return max(multi) if multi else max(small)


def score_and_loss(q_reps, p_reps, *, temperature):
    Bq, D = q_reps.shape
    Bp = p_reps.shape[0]
    Bp_pad = ((Bp + 127) // 128) * 128       # lane-dense scores last dim
    if Bp_pad != Bp:
        p_full = jnp.concatenate(
            [p_reps, jnp.zeros((Bp_pad - Bp, D), p_reps.dtype)], axis=0)
    else:
        p_full = p_reps

    tq = _pick_q_tile(Bq)
    _, vmem_limit = _vmem_budgets()
    kernel = functools.partial(_score_loss_kernel,
                               inv_temperature=1.0 / float(temperature),
                               num_passages=Bp, ratio=Bp // Bq, q_tile=tq)
    scores_pad, row_loss = pl.pallas_call(
        kernel,
        out_shape=(jax.ShapeDtypeStruct((Bq, Bp_pad), jnp.float32),
                   jax.ShapeDtypeStruct((Bq, 1), jnp.float32)),
        grid=(Bq // tq,),
        in_specs=[
            pl.BlockSpec((tq, D), lambda i: (i, 0)),
            pl.BlockSpec(memory_space=pltpu.MemorySpace.VMEM),   # p_reps resident
        ],
        out_specs=(
            pl.BlockSpec((tq, Bp_pad), lambda i: (i, 0)),
            pl.BlockSpec((tq, 1), lambda i: (i, 0)),
        ),
        compiler_params=pltpu.CompilerParams(
            dimension_semantics=("parallel",),
            vmem_limit_bytes=vmem_limit,
        ),
    )(q_reps, p_full)

    # reduction='mean' over queries; slice off padded passage columns.
    return scores_pad[:, :Bp], jnp.mean(row_loss)


# ----------------------------------------------------------------------------
# BiEncoderModel forward (training mode, negatives_cross_device=False)
# ----------------------------------------------------------------------------
def bi_encoder_forward(params, query, passage, *, normalized, temperature,
                       batch_tile=None):
    # Module semantics: inner-product similarity (normalized=False) resets T=1.
    if not normalized:
        temperature = 1.0

    emb_table = params["emb_table"].astype(jnp.bfloat16)
    w = params["dense_w"].astype(jnp.bfloat16)
    b = params["dense_b"].astype(jnp.float32).reshape(1, -1)

    # Plain-JAX glue: embedding lookup (input_ids -> embeddings), bf16 so the
    # kernel DMAs half the bytes and feeds the MXU its native dtype.
    # TODO(synk): at real vocab/seq sizes fuse this gather into the encode
    # kernel (scalar-prefetched input_ids + manual DMA row gather of the HBM
    # emb_table) to avoid materializing (B, S, H) in HBM and reading it back.
    q_emb = emb_table[query["input_ids"]]                 # (Bq, S, H) bf16
    p_emb = emb_table[passage["input_ids"]]               # (Bp, S, H) bf16
    q_mask = query["attention_mask"].astype(jnp.float32)
    p_mask = passage["attention_mask"].astype(jnp.float32)

    # Two pallas_calls (no wrapper-side concat: that would round-trip the full
    # (Bq+Bp, S, H) tensor through HBM just to DMA the small weights once).
    q_reps = encode(q_emb, q_mask, w, b, normalized=normalized,
                    batch_tile=batch_tile)
    p_reps = encode(p_emb, p_mask, w, b, normalized=normalized,
                    batch_tile=batch_tile)

    scores, loss = score_and_loss(q_reps, p_reps, temperature=temperature)
    return {"loss": loss, "scores": scores, "q_reps": q_reps, "p_reps": p_reps}


# ----------------------------------------------------------------------------
# Pure-JAX reference (same bf16 casts as the kernels) for a tolerance check
# ----------------------------------------------------------------------------
def _reference_forward(params, query, passage, *, normalized, temperature):
    if not normalized:
        temperature = 1.0
    table = params["emb_table"].astype(jnp.bfloat16)
    w = params["dense_w"].astype(jnp.bfloat16)
    b = params["dense_b"].astype(jnp.float32)

    def enc(ids, mask):
        x = table[ids]
        hid = jnp.einsum("bsh,hd->bsd", x, w, preferred_element_type=jnp.float32)
        hid = jnp.tanh(hid + b)
        m = mask.astype(jnp.float32)
        ssum = jnp.sum(hid * m[:, :, None], axis=1)
        reps = ssum / jnp.maximum(jnp.sum(m, axis=1, keepdims=True), 1e-9)
        if normalized:
            nrm = jnp.linalg.norm(reps, axis=-1, keepdims=True)
            reps = reps / jnp.maximum(nrm, 1e-12)
        return reps

    q = enc(query["input_ids"], query["attention_mask"])
    p = enc(passage["input_ids"], passage["attention_mask"])
    scores = (q @ p.T) / temperature
    tgt = jnp.arange(q.shape[0]) * (p.shape[0] // q.shape[0])
    mx = jnp.max(scores, axis=1, keepdims=True)
    lse = jnp.log(jnp.sum(jnp.exp(scores - mx), axis=1)) + mx[:, 0]
    loss = jnp.mean(lse - scores[jnp.arange(q.shape[0]), tgt])
    return scores, loss


if __name__ == "__main__":
    # Small but TPU-friendly shapes: H = D = 128 (lane-dense, (8,128)-aligned),
    # 8 queries with 2 passages each, seq = 8.
    Bq, Bp, S, H, VOCAB = 8, 16, 8, 128, 256
    NORMALIZED = True
    TEMPERATURE = 0.05      # kept because normalized=True (module semantics)

    key = jax.random.PRNGKey(0)
    k_emb, k_w, k_b, k_qid, k_pid = jax.random.split(key, 5)

    params = {
        "emb_table": jax.random.normal(k_emb, (VOCAB, H), jnp.float32) * 0.1,
        "dense_w": jax.random.normal(k_w, (H, H), jnp.float32) * 0.1,
        "dense_b": jax.random.normal(k_b, (1, H), jnp.float32) * 0.01,
    }

    q_ids = jax.random.randint(k_qid, (Bq, S), 0, VOCAB)
    p_ids = jax.random.randint(k_pid, (Bp, S), 0, VOCAB)
    # Attention masks with some padding at the end (lengths 1..S).
    q_len = (jnp.arange(Bq) % S) + 1
    p_len = (jnp.arange(Bp) % S) + 1
    q_mask = (jnp.arange(S)[None, :] < q_len[:, None]).astype(jnp.int32)
    p_mask = (jnp.arange(S)[None, :] < p_len[:, None]).astype(jnp.int32)

    query = {"input_ids": q_ids, "attention_mask": q_mask}
    passage = {"input_ids": p_ids, "attention_mask": p_mask}

    out = bi_encoder_forward(params, query, passage,
                             normalized=NORMALIZED, temperature=TEMPERATURE)
    jax.block_until_ready(out)

    assert out["q_reps"].shape == (Bq, H)
    assert out["p_reps"].shape == (Bp, H)
    assert out["scores"].shape == (Bq, Bp)
    assert out["loss"].shape == ()
    assert bool(jnp.isfinite(out["loss"]))
    # L2-normalized reps must have (approximately) unit norm.
    assert bool(jnp.allclose(jnp.linalg.norm(out["q_reps"], axis=-1), 1.0,
                             atol=1e-2))

    # Loose-tolerance check vs. pure-JAX reference (bf16 matmuls + rsqrt).
    ref_scores, ref_loss = _reference_forward(
        params, query, passage, normalized=NORMALIZED, temperature=TEMPERATURE)
    assert bool(jnp.allclose(out["scores"], ref_scores, atol=0.15, rtol=0.05))
    assert bool(jnp.allclose(out["loss"], ref_loss, atol=0.1))

    print("KERNEL_OK")
</pallas_src>

<mosaic_0001>
module attributes {stable_mosaic.version = 11 : i64} {
  func.func @_encode_kernel(%arg0: i32, %arg1: memref<8x8x128xbf16, #tpu.memory_space<vmem>>, %arg2: memref<8x8xf32, #tpu.memory_space<vmem>>, %arg3: memref<128x128xbf16, #tpu.memory_space<vmem>>, %arg4: memref<1x128xf32, #tpu.memory_space<vmem>>, %arg5: memref<8x128xf32, #tpu.memory_space<vmem>>) attributes {dimension_semantics = [#tpu.dimension_semantics<parallel>], iteration_bounds = array<i64: 1>, scalar_prefetch = 0 : i64, scratch_operands = 0 : i64, tpu.core_type = #tpu.core_type<tc>, window_params = [{transform_indices = @transform_0, window_bounds = array<i64: 8, 8, 128>}, {transform_indices = @transform_1, window_bounds = array<i64: 8, 8>}, {pipeline_mode = #tpu.pipeline_mode<synchronous>, transform_indices = @transform_2, window_bounds = array<i64: 128, 128>}, {pipeline_mode = #tpu.pipeline_mode<synchronous>, transform_indices = @transform_3, window_bounds = array<i64: 1, 128>}, {transform_indices = @transform_4, window_bounds = array<i64: 8, 128>}]} {
    %c0 = arith.constant 0 : index
    %c0_0 = arith.constant 0 : index
    %0 = vector.load %arg4[%c0, %c0_0] : memref<1x128xf32, #tpu.memory_space<vmem>>, vector<1x128xf32>
    %c0_1 = arith.constant 0 : index
    %c0_2 = arith.constant 0 : index
    %1 = vector.load %arg2[%c0_1, %c0_2] : memref<8x8xf32, #tpu.memory_space<vmem>>, vector<8x8xf32>
    %cst = arith.constant 0.000000e+00 : f32
    %2 = vector.broadcast %cst : f32 to vector<8x128xf32>
    %c0_3 = arith.constant 0 : index
    %c0_4 = arith.constant 0 : index
    %c0_5 = arith.constant 0 : index
    %3 = vector.load %arg1[%c0_3, %c0_4, %c0_5] : memref<8x8x128xbf16, #tpu.memory_space<vmem>>, vector<8x8x128xbf16>
    %4 = vector.shape_cast %3 : vector<8x8x128xbf16> to vector<64x128xbf16>
    %c0_6 = arith.constant 0 : index
    %c0_7 = arith.constant 0 : index
    %5 = vector.load %arg3[%c0_6, %c0_7] : memref<128x128xbf16, #tpu.memory_space<vmem>>, vector<128x128xbf16>
    %cst_8 = arith.constant dense<0.000000e+00> : vector<64x128xf32>
    %6 = tpu.matmul %4, %5, %cst_8 {dimension_numbers = #tpu.dot_dimension_numbers<[1], [0], [0], [1], [0, 0, 1, 1], [], []>} : vector<64x128xbf16>, vector<128x128xbf16>, vector<64x128xf32> -> vector<64x128xf32>
    %7 = vector.broadcast %0 : vector<1x128xf32> to vector<64x128xf32>
    %8 = arith.addf %6, %7 : vector<64x128xf32>
    %9 = math.tanh %8 : vector<64x128xf32>
    %10 = vector.shape_cast %9 : vector<64x128xf32> to vector<8x8x128xf32>
    %11 = vector.shape_cast %1 : vector<8x8xf32> to vector<8x8x1xf32>
    %12 = vector.broadcast %11 : vector<8x8x1xf32> to vector<8x8x128xf32>
    %13 = arith.mulf %10, %12 : vector<8x8x128xf32>
    %cst_9 = arith.constant dense<0.000000e+00> : vector<8x128xf32>
    %14 = vector.multi_reduction <add>, %13, %cst_9 [1] : vector<8x8x128xf32> to vector<8x128xf32>
    %15 = arith.addf %2, %14 : vector<8x128xf32>
    %16 = arith.mulf %15, %15 : vector<8x128xf32>
    %cst_10 = arith.constant dense<0.000000e+00> : vector<8xf32>
    %17 = vector.multi_reduction <add>, %16, %cst_10 [1] : vector<8x128xf32> to vector<8xf32>
    %18 = vector.shape_cast %17 : vector<8xf32> to vector<8x1xf32>
    %cst_11 = arith.constant 1.000000e-24 : f32
    %19 = vector.broadcast %cst_11 : f32 to vector<8x1xf32>
    %20 = arith.maximumf %18, %19 : vector<8x1xf32>
    %21 = math.rsqrt %20 : vector<8x1xf32>
    %22 = vector.broadcast %21 : vector<8x1xf32> to vector<8x128xf32>
    %23 = arith.mulf %15, %22 : vector<8x128xf32>
    %c0_12 = arith.constant 0 : index
    %c0_13 = arith.constant 0 : index
    %24 = vector.load %arg5[%c0_12, %c0_13] : memref<8x128xf32, #tpu.memory_space<vmem>>, vector<8x128xf32>
    tpu.vector_store %arg5[%c0_12, %c0_13], %23 {strides = array<i32>} : memref<8x128xf32, #tpu.memory_space<vmem>>, vector<8x128xf32>,
    return
  }
  func.func @transform_0(%arg0: i32) -> (i32, i32, i32) {
    %c0_i32 = arith.constant 0 : i32
    %c0_i32_0 = arith.constant 0 : i32
    %c0_i32_1 = arith.constant 0 : i32
    return %arg0, %c0_i32, %c0_i32_0 : i32, i32, i32
  }
  func.func @transform_1(%arg0: i32) -> (i32, i32) {
    %c0_i32 = arith.constant 0 : i32
    %c0_i32_0 = arith.constant 0 : i32
    return %arg0, %c0_i32 : i32, i32
  }
  func.func @transform_2(%arg0: i32) -> (i32, i32) {
    %c0_i32 = arith.constant 0 : i32
    %c0_i32_0 = arith.constant 0 : i32
    %c0_i32_1 = arith.constant 0 : i32
    return %c0_i32, %c0_i32_0 : i32, i32
  }
  func.func @transform_3(%arg0: i32) -> (i32, i32) {
    %c0_i32 = arith.constant 0 : i32
    %c0_i32_0 = arith.constant 0 : i32
    %c0_i32_1 = arith.constant 0 : i32
    return %c0_i32, %c0_i32_0 : i32, i32
  }
  func.func @transform_4(%arg0: i32) -> (i32, i32) {
    %c0_i32 = arith.constant 0 : i32
    %c0_i32_0 = arith.constant 0 : i32
    return %arg0, %c0_i32 : i32, i32
  }
}

</mosaic_0001>

<bundles_post_ra>
// kernel: tpu_custom_call.1
= control target key start
LH: loop header
LB: loop body
LE: loop exit
PB: predicated region body
PF: predicated region fallthrough
CT: control target
= control target key end

     0   :  { %9 = vsyncpa [#allocation3], 0  ;;  %s752_s0 = inlined_call_operand.hbm [shape: bf16[8,8,128], index: 0, kind: input, shape index: {}]   ;;  %s753_s1 = inlined_call_operand.hbm [shape: f32[8,8], index: 1, kind: input, shape index: {}]   ;;  %s754_s2 = inlined_call_operand.hbm [shape: bf16[128,128], index: 2, kind: input, shape index: {}]   ;;  %s755_s3 = inlined_call_operand.vmem [shape: f32[1,128], index: 3, kind: input, shape index: {}]   ;;  %s756_s4 = inlined_call_operand.hbm [shape: f32[8,128], index: 4, kind: output, shape index: {}]  }
   0x1   :  { %10 = vsyncpa [#allocation6], 0 }
   0x2   :  { %11 = vsyncpa [#allocation4], 0  ;;  %s649_s15 = smov [#allocation5]   ;;  %s650_s17 = smov [#allocation2]  }
   0x3   :  { %s30_s16 = sshll.u32 %s649_s15, 4  ;;  %s17_s18 = sshll.u32 %s650_s17, 4  ;;  %s31_s16 = int_to_ptr.vmem [resolvable:$true] %s30_s16  ;;  %s680_s18 = int_to_ptr.vmem [resolvable:$true] %s17_s18 }
   0x4   :  { %s555_s21 = scalar_lea.hbm %s753_s1, 128 }
   0x5   :  { %p556_p0 = scmp.ne.s32.totalorder %s753_s1, %s555_s21  ;;  %p559_p1 = scmp.lt.u32.totalorder %s555_s21, %s753_s1 }
   0x7   :  { %p561_p2 = pnand %p559_p1, %p556_p0 }
   0x9   :  { %564 = shalt.err (!%p561_p2)
}
   0xa   :  { %s565_s26 = scalar_lea.vmem %s31_s16, 128  ;;  %p570_p4 = scmp.lt.s32.totalorder %s31_s16, %s31_s16 }
   0xb   :  { %p566_p3 = scmp.ne.s32.totalorder %s31_s16, %s565_s26  ;;  %p571_p5 = scmp.lt.s32.totalorder %s565_s26, %s565_s26 }
   0xd   :  { %p572_p6 = por %p571_p5, %p570_p4 }
   0xf   :  { %p573_p7 = pnand %p572_p6, %p566_p3 }
  0x11   :  { %576 = shalt.err (!%p573_p7)
}
  0x12   :  { %33 = dma.hbm_to_vmem [thread:$0]  %s753_s1, 128, %s31_s16, [#allocation6]  }
  0x13   :  { %s577_s5 = scalar_lea.hbm %s752_s0, 512 }
  0x14   :  { %p578_p8 = scmp.ne.s32.totalorder %s752_s0, %s577_s5  ;;  %p581_p9 = scmp.lt.u32.totalorder %s577_s5, %s752_s0 }
  0x16   :  { %p583_p10 = pnand %p581_p9, %p578_p8 }
  0x18   :  { %586 = shalt.err (!%p583_p10)
}
  0x19   :  { %s587_s10 = scalar_lea.vmem %s680_s18, 512  ;;  %p592_p12 = scmp.lt.s32.totalorder %s680_s18, %s680_s18 }
  0x1a   :  { %p588_p11 = scmp.ne.s32.totalorder %s680_s18, %s587_s10  ;;  %p593_p13 = scmp.lt.s32.totalorder %s587_s10, %s587_s10 }
  0x1c   :  { %p594_p0 = por %p593_p13, %p592_p12 }
  0x1e   :  { %p595_p1 = pnand %p594_p0, %p588_p11 }
  0x20   :  { %598 = shalt.err (!%p595_p1)
}
  0x21   :  { %s651_s1 = smov 64   ;;  %s652_s11 = smov 4  }
  0x22   :  { %23 = dma.hbm_to_vmem [thread:$0]  %s752_s0, 512, %s680_s18, [#allocation3], %s651_s1, %s651_s1, %s652_s11  }
  0x23   :  { %s653_s14 = smov [#allocation7]   ;;  %s599_s19 = scalar_lea.hbm %s754_s2, 1024 }
  0x24   :  { %s39_s15 = sshll.u32 %s653_s14, 4  ;;  %p600_p2 = scmp.ne.s32.totalorder %s754_s2, %s599_s19  ;;  %s40_s15 = int_to_ptr.vmem [resolvable:$true] %s39_s15 }
  0x25   :  { %p603_p3 = scmp.lt.u32.totalorder %s599_s19, %s754_s2 }
  0x27   :  { %p605_p4 = pnand %p603_p3, %p600_p2 }
  0x29   :  { %608 = shalt.err (!%p605_p4)
}
  0x2a   :  { %s609_s24 = scalar_lea.vmem %s40_s15, 1024  ;;  %p614_p6 = scmp.lt.s32.totalorder %s40_s15, %s40_s15 }
  0x2b   :  { %p610_p5 = scmp.ne.s32.totalorder %s40_s15, %s609_s24  ;;  %p615_p7 = scmp.lt.s32.totalorder %s609_s24, %s609_s24 }
  0x2d   :  { %p616_p8 = por %p615_p7, %p614_p6 }
  0x2f   :  { %p617_p9 = pnand %p616_p8, %p610_p5 }
  0x31   :  { %620 = shalt.err (!%p617_p9)
}
  0x32   :  { %45 = dma.hbm_to_vmem [thread:$0]  %s754_s2, 1024, %s40_s15, [#allocation6], %s651_s1, %s651_s1, %s652_s11  }
  0x33   :  { %643 = dma.done.wait [#allocation3], 512  }
  0x34   :  { %644 = vsyncadd [#allocation3], 4294966784 }
  0x35   :  { %645 = dma.done.wait [#allocation6], 1152  }
  0x36   :  { %646 = vsyncadd [#allocation6], 4294966144  ;;  %v525_v0 = vld [vmem:[#allocation7] sm:$0xff]   ;;  %v235_v1 = vlaneseq  ;;  %v526_v2 = vld [vmem:[#allocation7 + $0x8] sm:$0xff]   ;;  %vm371_vm0 = vcmask 1041409   ;;  %vm373_vm1 = vcmask 1042434  }
  0x37   :  { %479 = vmatprep.subr.bf16.mxu0 %v525_v0  ;;  %503 = vmatprep.subr.bf16.mxu1 %v525_v0  ;;  %v527_v3 = vld [vmem:[#allocation7 + $0x10] sm:$0xff]   ;;  %v528_v5 = vld [vmem:[#allocation7 + $0x18] sm:$0xff]   ;;  %v534_v8 = vld [vmem:[#allocation2 + $0x10] sm:$0xff]   ;;  %vm375_vm2 = vcmask 1043459   ;;  %vm377_vm3 = vcmask 1044484   ;;  %vm379_vm4 = vcmask 1045509  }
  0x38   :  { %480 = vmatpush3.bf16.msra.mxu0 %v525_v0  ;;  %511 = vmatpush3.bf16.msra.mxu1 %v525_v0  ;;  %v236_v4 = vshrl.u32 %v235_v1, 7  ;;  %v533_v6 = vld [vmem:[#allocation2] sm:$0xff]   ;;  %v529_v10 = vld [vmem:[#allocation7 + $0x20] sm:$0xff]   ;;  %v530_v16 = vld [vmem:[#allocation7 + $0x28] sm:$0xff]   ;;  %vm381_vm5 = vcmask 1046534   ;;  %vm383_vm6 = vcmask 1047559  }
  0x39   :  { %481 = vmatprep.subr.bf16.mxu0 %v526_v2  ;;  %504 = vmatprep.subr.bf16.mxu1 %v526_v2  ;;  %v59_v11 = vld [vmem:[#allocation5] sm:$0xff]  ;;  %v531_v21 = vld [vmem:[#allocation7 + $0x30] sm:$0xff]   ;;  %v535_v29 = vld [vmem:[#allocation2 + $0x8] sm:$0xff]  }
  0x3a   :  { %v237_v7 = vsub.s32 0, %v236_v4  ;;  %v251_v9 = vsub.s32 2, %v236_v4  ;;  %495 = vmatprep.mubr.bf16.mxu0 %v533_v6  ;;  %499 = vmatprep.mubr.bf16.mxu1 %v534_v8  ;;  %v244_v14 = vsub.s32 1, %v236_v4  ;;  %v258_v15 = vsub.s32 3, %v236_v4  ;;  %v532_v26 = vld [vmem:[#allocation7 + $0x38] sm:$0xff]   ;;  %v536_v30 = vld [vmem:[#allocation2 + $0x18] sm:$0xff]  }
  0x3b   :  { %v265_v19 = vsub.s32 4, %v236_v4  ;;  %v272_v20 = vsub.s32 5, %v236_v4  ;;  %v279_v24 = vsub.s32 6, %v236_v4  ;;  %v286_v25 = vsub.s32 7, %v236_v4  ;;  %v454_v32 = vld [vmem:[%s755_s3] ss:$0 sm:$0xff] }
  0x3c   :  { %482 = vmatpush3.bf16.msra.mxu0 %v526_v2  ;;  %512 = vmatpush3.bf16.msra.mxu1 %v526_v2  ;;  %v238_v12 = vrot.slane %v59_v11, %v237_v7  ;;  %v252_v13 = vrot.slane %v59_v11, %v251_v9  ;;  %v245_v17 = vrot.slane %v59_v11, %v244_v14  ;;  %s654_s3 = smov [#allocation8]  }
  0x3d   :  { %483 = vmatprep.subr.bf16.mxu0 %v527_v3  ;;  %505 = vmatprep.subr.bf16.mxu1 %v527_v3  ;;  %v259_v18 = vrot.slane %v59_v11, %v258_v15  ;;  %v266_v22 = vrot.slane %v59_v11, %v265_v19  ;;  %v273_v23 = vrot.slane %v59_v11, %v272_v20  ;;  %s444_s26 = sshll.u32 %s654_s3, 4  ;;  %s445_s26 = int_to_ptr.vmem [resolvable:$true] %s444_s26 }
  0x3e   :  { %240 = vbcast.lane.b32.xlu0 %v238_v12, 256  ;;  %254 = vbcast.lane.b32.xlu1 %v252_v13, 256  ;;  %v280_v27 = vrot.slane %v59_v11, %v279_v24  ;;  %v287_v28 = vrot.slane %v59_v11, %v286_v25  ;;  %s621_s27 = scalar_lea.vmem %s445_s26, 128  ;;  %p626_p11 = scmp.lt.s32.totalorder %s445_s26, %s445_s26 }
  0x3f   :  { %p622_p10 = scmp.ne.s32.totalorder %s445_s26, %s621_s27  ;;  %p627_p12 = scmp.lt.s32.totalorder %s621_s27, %s621_s27 }
  0x40   :  { %484 = vmatpush3.bf16.msra.mxu0 %v527_v3  ;;  %513 = vmatpush3.bf16.msra.mxu1 %v527_v3 }
  0x41   :  { %485 = vmatprep.subr.bf16.mxu0 %v528_v5  ;;  %506 = vmatprep.subr.bf16.mxu1 %v528_v5  ;;  %p628_p13 = por %p627_p12, %p626_p11 }
  0x42   :  { %247 = vbcast.lane.b32.xlu0 %v245_v17, 256  ;;  %261 = vbcast.lane.b32.xlu1 %v259_v18, 256 }
  0x43   :  { %p629_p0 = pnand %p628_p13, %p622_p10 }
  0x44   :  { %486 = vmatpush3.bf16.msra.mxu0 %v528_v5  ;;  %514 = vmatpush3.bf16.msra.mxu1 %v528_v5 }
  0x45   :  { %487 = vmatprep.subr.bf16.mxu0 %v529_v10  ;;  %507 = vmatprep.subr.bf16.mxu1 %v529_v10 }
  0x46   :  { %268 = vbcast.lane.b32.xlu0 %v266_v22, 256  ;;  %275 = vbcast.lane.b32.xlu1 %v273_v23, 256 }
  0x48   :  { %488 = vmatpush3.bf16.msra.mxu0 %v529_v10  ;;  %515 = vmatpush3.bf16.msra.mxu1 %v529_v10 }
  0x49   :  { %489 = vmatprep.subr.bf16.mxu0 %v530_v16  ;;  %508 = vmatprep.subr.bf16.mxu1 %v530_v16 }
  0x4a   :  { %282 = vbcast.lane.b32.xlu0 %v280_v27, 256  ;;  %289 = vbcast.lane.b32.xlu1 %v287_v28, 256 }
  0x4c   :  { %490 = vmatpush3.bf16.msra.mxu0 %v530_v16  ;;  %516 = vmatpush3.bf16.msra.mxu1 %v530_v16 }
  0x4d   :  { %491 = vmatprep.subr.bf16.mxu0 %v531_v21  ;;  %509 = vmatprep.subr.bf16.mxu1 %v531_v21 }
  0x50   :  { %492 = vmatpush3.bf16.msra.mxu0 %v531_v21  ;;  %517 = vmatpush3.bf16.msra.mxu1 %v531_v21 }
  0x51   :  { %493 = vmatprep.subr.bf16.mxu0 %v532_v26  ;;  %510 = vmatprep.subr.bf16.mxu1 %v532_v26 }
  0x54   :  { %494 = vmatpush3.bf16.msra.mxu0 %v532_v26  ;;  %518 = vmatpush3.bf16.msra.mxu1 %v532_v26 }
  0x57   :  { %496 = vmatmul.mubr.bf16.vlgmr.msra.gmra.mrb[0].mxu0 %v535_v29  ;;  %500 = vmatmul.mubr.bf16.vlgmr.msra.gmra.mrb[0].mxu1 %v536_v30 }
  0xb0   :  { %v241_v31 = vpop.permute.xlu0 %240  ;;  %v255_v33 = vpop.permute.xlu1 %254 }
  0xb4   :  { %v248_v34 = vpop.permute.xlu0 %247  ;;  %v262_v49 = vpop.permute.xlu1 %261 }
  0xb8   :  { %v269_v52 = vpop.permute.xlu0 %268  ;;  %v276_v53 = vpop.permute.xlu1 %275 }
  0xbc   :  { %v283_v54 = vpop.permute.xlu0 %282  ;;  %v290_v63 = vpop.permute.xlu1 %289 }
 0x12a   :  { %v497_v35 = vpop.f32.mrb[0].mxu0  ;;  %v501_v36 = vpop.f32.mrb[0].mxu1 }
 0x12b   :  { %v205_v37 = vadd.f32 %v497_v35, %v454_v32  ;;  %v221_v38 = vadd.f32 %v501_v36, %v454_v32  ;;  %v196_v39 = vpop.f32.mrb[1].mxu0  ;;  %v212_v40 = vpop.f32.mrb[1].mxu1 }
 0x12c   :  { %v197_v41 = vadd.f32 %v454_v32, %v196_v39  ;;  %v213_v42 = vadd.f32 %v454_v32, %v212_v40  ;;  %v498_v43 = vpop.f32.mrb[2].mxu0  ;;  %v502_v44 = vpop.f32.mrb[2].mxu1 }
 0x12d   :  { %537 = vtanh.f32 %v205_v37  ;;  %v208_v45 = vadd.f32 %v498_v43, %v454_v32  ;;  %v199_v46 = vpop.f32.mrb[3].mxu0  ;;  %v215_v47 = vpop.f32.mrb[3].mxu1  ;;  %v224_v48 = vadd.f32 %v502_v44, %v454_v32 }
 0x12e   :  { %539 = vtanh.f32 %v221_v38  ;;  %v200_v50 = vadd.f32 %v454_v32, %v199_v46  ;;  %v216_v51 = vadd.f32 %v454_v32, %v215_v47 }
 0x12f   :  { %541 = vtanh.f32 %v197_v41 }
 0x130   :  { %543 = vtanh.f32 %v213_v42 }
 0x131   :  { %545 = vtanh.f32 %v208_v45 }
 0x132   :  { %547 = vtanh.f32 %v224_v48 }
 0x133   :  { %549 = vtanh.f32 %v200_v50 }
 0x134   :  { %551 = vtanh.f32 %v216_v51 }
 0x137   :  { %v538_v55 = vpop.eup %537 }
 0x138   :  { %v540_v56 = vpop.eup %539  ;;  %v293_v57 = vmul.f32 %v538_v55, %v255_v33 }
 0x139   :  { %v542_v58 = vpop.eup %541  ;;  %v297_v59 = vmul.f32 %v540_v56, %v283_v54 }
 0x13a   :  { %v544_v60 = vpop.eup %543  ;;  %v291_v61 = vmul.f32 %v542_v58, %v241_v31  ;;  %v311_v62 = vrot.slane %v293_v57, 4 }
 0x13b   :  { %v546_v0 = vpop.eup %545  ;;  %v295_v1 = vmul.f32 %v544_v60, %v269_v52  ;;  %v335_v2 = vrot.slane %v297_v59, 4 }
 0x13c   :  { %v548_v3 = vpop.eup %547  ;;  %v299_v4 = vrot.slane %v291_v61, 4  ;;  %v312_v5 = vadd.f32 %v311_v62, %v293_v57  ;;  %v294_v6 = vmul.f32 %v546_v0, %v262_v49 }
 0x13d   :  { %v550_v7 = vpop.eup %549  ;;  %v323_v8 = vrot.slane %v295_v1, 4  ;;  %v336_v9 = vadd.f32 %v335_v2, %v297_v59  ;;  %v298_v10 = vmul.f32 %v548_v3, %v290_v63 }
 0x13e   :  { %v552_v11 = vpop.eup %551  ;;  %v300_v12 = vadd.f32 %v299_v4, %v291_v61  ;;  %v313_v13 = vrot.slane %v312_v5, 2  ;;  %v292_v14 = vmul.f32 %v550_v7, %v248_v34  ;;  %v317_v15 = vrot.slane %v294_v6, 4 }
 0x13f   :  { %v324_v16 = vadd.f32 %v323_v8, %v295_v1  ;;  %v296_v17 = vmul.f32 %v552_v11, %v276_v53  ;;  %v341_v18 = vrot.slane %v298_v10, 4  ;;  %v337_v22 = vrot.slane %v336_v9, 2 }
 0x140   :  { %v301_v19 = vrot.slane %v300_v12, 2  ;;  %v305_v20 = vrot.slane %v292_v14, 4  ;;  %v318_v21 = vadd.f32 %v317_v15, %v294_v6  ;;  %v314_v23 = vadd.f32 %v313_v13, %v312_v5 }
 0x141   :  { %v325_v24 = vrot.slane %v324_v16, 2  ;;  %v329_v25 = vrot.slane %v296_v17, 4  ;;  %v342_v26 = vadd.f32 %v341_v18, %v298_v10  ;;  %v338_v38 = vadd.f32 %v337_v22, %v336_v9 }
 0x142   :  { %v302_v27 = vadd.f32 %v301_v19, %v300_v12  ;;  %v306_v28 = vadd.f32 %v305_v20, %v292_v14  ;;  %v319_v29 = vrot.slane %v318_v21, 2  ;;  %v315_v36 = vrot.slane %v314_v23, 1 }
 0x143   :  { %v326_v30 = vadd.f32 %v325_v24, %v324_v16  ;;  %v330_v31 = vadd.f32 %v329_v25, %v296_v17  ;;  %v343_v32 = vrot.slane %v342_v26, 2  ;;  %v339_v48 = vrot.slane %v338_v38, 1 }
 0x144   :  { %v303_v33 = vrot.slane %v302_v27, 1  ;;  %v307_v34 = vrot.slane %v306_v28, 2  ;;  %v320_v35 = vadd.f32 %v319_v29, %v318_v21  ;;  %v316_v46 = vadd.f32 %v315_v36, %v314_v23 }
 0x145   :  { %v331_v37 = vrot.slane %v330_v31, 2  ;;  %v344_v41 = vadd.f32 %v343_v32, %v342_v26  ;;  %v327_v42 = vrot.slane %v326_v30, 1  ;;  %v340_v57 = vadd.f32 %v339_v48, %v338_v38 }
 0x146   :  { %v308_v39 = vadd.f32 %v307_v34, %v306_v28  ;;  %v321_v40 = vrot.slane %v320_v35, 1  ;;  %v304_v44 = vadd.f32 %v303_v33, %v302_v27  ;;  %v357_v56 = vmul.f32 %v316_v46, %v316_v46 }
 0x147   :  { %v332_v43 = vadd.f32 %v331_v37, %v330_v31  ;;  %v345_v51 = vrot.slane %v344_v41, 1  ;;  %v328_v52 = vadd.f32 %v327_v42, %v326_v30  ;;  %v361_v1 = vmul.f32 %v340_v57, %v340_v57 }
 0x148   :  { %v309_v45 = vrot.slane %v308_v39, 1  ;;  %v322_v50 = vadd.f32 %v321_v40, %v320_v35  ;;  %v355_v53 = vmul.f32 %v304_v44, %v304_v44 }
 0x149   :  { %v333_v47 = vrot.slane %v332_v43, 1  ;;  %v346_v60 = vadd.f32 %v345_v51, %v344_v41  ;;  %v359_v61 = vmul.f32 %v328_v52, %v328_v52 }
 0x14a   :  { %v310_v49 = vadd.f32 %v309_v45, %v308_v39  ;;  %v358_v59 = vmul.f32 %v322_v50, %v322_v50 }
 0x14b   :  { %v334_v55 = vadd.f32 %v333_v47, %v332_v43  ;;  %v362_v3 = vmul.f32 %v346_v60, %v346_v60 }
 0x14c   :  { %v356_v54 = vmul.f32 %v310_v49, %v310_v49 }
 0x14d   :  { %v360_v63 = vmul.f32 %v334_v55, %v334_v55 }
 0x14e   :  { %v372_v58 = vsel %vm371_vm0, %v356_v54, %v355_v53 }
 0x14f   :  { %v374_v62 = vsel %vm373_vm1, %v357_v56, %v372_v58 }
 0x150   :  { %v376_v0 = vsel %vm375_vm2, %v358_v59, %v374_v62 }
 0x151   :  { %v378_v2 = vsel %vm377_vm3, %v359_v61, %v376_v0 }
 0x152   :  { %v380_v4 = vsel %vm379_vm4, %v360_v63, %v378_v2 }
 0x153   :  { %v382_v5 = vsel %vm381_vm5, %v361_v1, %v380_v4 }
 0x154   :  { %v384_v6 = vsel %vm383_vm6, %v362_v3, %v382_v5 }
 0x155   :  { %386 = vadd.xlane.f32.xlu0 %v384_v6 }
 0x1e2   :  { %v387_v7 = vpop.xlane.xlu0 %386 }
 0x1e3   :  { %v388_v8 = vmax.f32 %v387_v7, 1e-24 }
 0x1e5   :  { %553 = vrsqrt.f32 %v388_v8 }
 0x1ef   :  { %v554_v9 = vpop.eup %553 }
 0x1f0   :  { %v391_v10 = vrot.slane %v554_v9, 1  ;;  %v392_v11 = vrot.slane %v554_v9, 2  ;;  %v393_v12 = vrot.slane %v554_v9, 3  ;;  %v394_v13 = vrot.slane %v554_v9, 4 }
 0x1f1   :  { %v395_v14 = vrot.slane %v554_v9, 5  ;;  %v396_v15 = vrot.slane %v554_v9, 6  ;;  %v397_v16 = vrot.slane %v554_v9, 7  ;;  %v406_v21 = vmul.f32 %v554_v9, %v304_v44 }
 0x1f2   :  { %v407_v17 = vmul.f32 %v391_v10, %v310_v49  ;;  %v408_v18 = vmul.f32 %v392_v11, %v316_v46  ;;  %v409_v19 = vmul.f32 %v393_v12, %v322_v50  ;;  %v410_v20 = vmul.f32 %v394_v13, %v328_v52 }
 0x1f3   :  { %v411_v22 = vmul.f32 %v395_v14, %v334_v55  ;;  %v412_v25 = vmul.f32 %v396_v15, %v340_v57  ;;  %v413_v26 = vmul.f32 %v397_v16, %v346_v60 }
 0x1f4   :  { %v422_v23 = vrot.slane %v407_v17, 7  ;;  %v424_v24 = vrot.slane %v408_v18, 6  ;;  %v426_v28 = vrot.slane %v409_v19, 5  ;;  %v428_v30 = vrot.slane %v410_v20, 4 }
 0x1f5   :  { %v430_v32 = vrot.slane %v411_v22, 3  ;;  %v432_v34 = vrot.slane %v412_v25, 2  ;;  %v434_v36 = vrot.slane %v413_v26, 1 }
 0x1f6   :  { %v423_v27 = vsel %vm371_vm0, %v422_v23, %v406_v21 }
 0x1f7   :  { %v425_v29 = vsel %vm373_vm1, %v424_v24, %v423_v27 }
 0x1f8   :  { %v427_v31 = vsel %vm375_vm2, %v426_v28, %v425_v29 }
 0x1f9   :  { %v429_v33 = vsel %vm377_vm3, %v428_v30, %v427_v31 }
 0x1fa   :  { %v431_v35 = vsel %vm379_vm4, %v430_v32, %v429_v33 }
 0x1fb   :  { %v433_v37 = vsel %vm381_vm5, %v432_v34, %v431_v35 }
 0x1fc   :  { %v435_v38 = vsel %vm383_vm6, %v434_v36, %v433_v37 }
 0x1fd   :  { %437 = vst [vmem:[#allocation8] sm:$0xff] %v435_v38 }
 0x1fe   :  { %632 = shalt.err (!%p629_p0)
}
 0x1ff   :  { %s633_s30 = scalar_lea.hbm %s756_s4, 128 }
 0x200   :  { %p634_p1 = scmp.ne.s32.totalorder %s756_s4, %s633_s30  ;;  %p637_p2 = scmp.lt.u32.totalorder %s633_s30, %s756_s4 }
 0x202   :  { %p639_p3 = pnand %p637_p2, %p634_p1 }
 0x204   :  { %642 = shalt.err (!%p639_p3)
}
 0x205   :  { %447 = dma.vmem_to_hbm [thread:$0]  %s445_s26, 128, %s756_s4, [#allocation4]  }
 0x206   :  { %647 = dma.done.wait [#allocation4], 128  }
 0x207   :  { %648 = vsyncadd [#allocation4], 4294967168 }
 0x208   :  { %451 = vsyncpa [#allocation3], 1 }
 0x209   :  { %452 = vsyncpa [#allocation6], 1 }
 0x20a   :  { %453 = vsyncpa [#allocation4], 1 }

</bundles_post_ra>
